<compile_context>
chip_gen: v6e
topology: v6e:2x2x1
jax: 0.10.0
libtpu: 0.0.40
codegen_flags: <defaults>
</compile_context>

<pallas_src>
import jax
import jax.numpy as jnp
from jax.experimental import pallas as pl
from jax.experimental.pallas import tpu as pltpu

NUM_CLASSES = 21                     # out-features of the second Linear

_LANE = 128
_SUBLANE = 8
_MAX_LANES_PER_TILE = 4096           # lane-dense hw tile cap (multiple of 128)
_MAX_TILE_BYTES = 8 * 1024 * 1024    # per stream, per buffer
_VMEM_LIMIT_BYTES = 48 * 1024 * 1024 # safe on v7x (64 MiB phys) and v5e/v6e (128 MiB)
_MAX_BATCH_TILE = 512                # weights-kernel batch tile (multiple of 8)


# ----------------------------------------------------------------------------
# Kernel 1: projection MLP + softmax -> (bt, 21) weights per batch tile.
# ----------------------------------------------------------------------------
def _weights_kernel(x_ref, w1_ref, b1_ref, w2_ref, b2_ref, wts_ref):
    x = x_ref[...]                                                        # (bt, hidden)
    h = jnp.dot(x, w1_ref[...], preferred_element_type=jnp.float32) + b1_ref[...]
    h = jnp.maximum(h, 0.0)                                               # ReLU
    e = jnp.dot(h, w2_ref[...], preferred_element_type=jnp.float32) + b2_ref[...]  # (bt, 21)

    # numerically-stable softmax over the 21 classes; exact divide (runs once,
    # nowhere near the bottleneck -> no approx reciprocal error injected).
    e = e - jnp.max(e, axis=-1, keepdims=True)
    p = jnp.exp(e)
    s = jnp.sum(p, axis=-1, keepdims=True)
    wts_ref[...] = p / s


# ----------------------------------------------------------------------------
# Kernel 2: flattened 2-D broadcast multiply  out[r,hw] = f2[r,hw] * w[r]
# ----------------------------------------------------------------------------
def _scale_kernel(w_ref, f2_ref, out_ref):
    # w_ref: (row_tile, 1) f32;  f2_ref/out_ref: (row_tile, hw_tile) native dtype.
    # Multiply in the streaming dtype (bf16 stays bf16 on v6e/v7x VALUs).
    out_ref[...] = f2_ref[...] * w_ref[...].astype(out_ref.dtype)


# ----------------------------------------------------------------------------
# Tile selection
# ----------------------------------------------------------------------------
def _pick_scale_tiles(rows, hw, itemsize):
    """Lane-dense (row_tile, hw_tile) within the per-buffer byte budget."""
    if hw <= _MAX_LANES_PER_TILE:
        hw_tile = hw                                   # full last dim is always legal
    else:
        hw_tile = _MAX_LANES_PER_TILE                  # multiple of 128; cdiv masks edge
    max_rows = max(1, _MAX_TILE_BYTES // (hw_tile * itemsize))
    if rows <= max_rows:
        row_tile = rows                                # full second-last dim is legal
    else:
        row_tile = max(_SUBLANE, (max_rows // _SUBLANE) * _SUBLANE)  # 8-aligned
    return row_tile, hw_tile


def _pick_batch_tile(batch):
    return batch if batch <= _MAX_BATCH_TILE else _MAX_BATCH_TILE


# ----------------------------------------------------------------------------
# Parameters / wrapper
# ----------------------------------------------------------------------------
def init_params(hidden_dim, key):
    """Deterministic synthetic params matching nn.Linear shapes (uniform +-1/sqrt(fan_in))."""
    k1, k2, k3, k4 = jax.random.split(key, 4)
    lim1 = 1.0 / float(hidden_dim) ** 0.5
    lim2 = 1.0 / 64.0 ** 0.5
    w1 = jax.random.uniform(k1, (hidden_dim, 64), jnp.float32, -lim1, lim1)
    b1 = jax.random.uniform(k2, (1, 64), jnp.float32, -lim1, lim1)
    w2 = jax.random.uniform(k3, (64, NUM_CLASSES), jnp.float32, -lim2, lim2)
    b2 = jax.random.uniform(k4, (1, NUM_CLASSES), jnp.float32, -lim2, lim2)
    return w1, b1, w2, b2


def attention_forward(feature_1, feature_2, params):
    w1, b1, w2, b2 = params
    B, _, D = feature_1.shape
    Bf, C, H, W = feature_2.shape
    assert Bf == B and C == NUM_CLASSES

    # ---- weights = softmax(MLP(feature_1.squeeze(1))) : tiny, batch-tiled ----
    x = feature_1.reshape(B, D)                       # native dtype; MXU accumulates f32
    bt = _pick_batch_tile(B)
    weights = pl.pallas_call(
        _weights_kernel,
        out_shape=jax.ShapeDtypeStruct((B, C), jnp.float32),
        grid=(pl.cdiv(B, bt),),
        in_specs=[
            pl.BlockSpec((bt, D), lambda i: (i, 0)),
            pl.BlockSpec((D, 64), lambda i: (0, 0)),            # resident params
            pl.BlockSpec((1, 64), lambda i: (0, 0)),
            pl.BlockSpec((64, C), lambda i: (0, 0)),
            pl.BlockSpec((1, C), lambda i: (0, 0)),
        ],
        out_specs=pl.BlockSpec((bt, C), lambda i: (i, 0)),
        compiler_params=pltpu.CompilerParams(dimension_semantics=("parallel",)),
    )(x, w1, b1, w2, b2)

    # ---- outputs = feature_2 * weights[..., None, None] : flattened 2-D stream ----
    HW = H * W
    ROWS = B * C
    f2 = feature_2.reshape(ROWS, HW)                  # (B*C, HW), native dtype, lane-dense
    w_flat = weights.reshape(ROWS, 1)                 # per-row scale

    row_tile, hw_tile = _pick_scale_tiles(ROWS, HW, jnp.dtype(feature_2.dtype).itemsize)
    n_row = pl.cdiv(ROWS, row_tile)
    n_hw = pl.cdiv(HW, hw_tile)

    # Put the longer axis first so the leading "parallel" axis has >= 2 iterations
    # whenever possible (v7x megacore sharding across 2 TensorCores).
    if n_row >= n_hw:
        grid = (n_row, n_hw)
        w_idx = lambda r, s: (r, 0)
        f_idx = lambda r, s: (r, s)
    else:
        grid = (n_hw, n_row)
        w_idx = lambda s, r: (r, 0)
        f_idx = lambda s, r: (r, s)

    out_flat = pl.pallas_call(
        _scale_kernel,
        out_shape=jax.ShapeDtypeStruct((ROWS, HW), feature_2.dtype),
        grid=grid,
        in_specs=[
            pl.BlockSpec((row_tile, 1), w_idx),            # tiny per-row scales
            pl.BlockSpec((row_tile, hw_tile), f_idx),      # dominant HBM stream
        ],
        out_specs=pl.BlockSpec((row_tile, hw_tile), f_idx),
        compiler_params=pltpu.CompilerParams(
            dimension_semantics=("parallel", "parallel"),
            vmem_limit_bytes=_VMEM_LIMIT_BYTES,
        ),
    )(w_flat, f2)

    return out_flat.reshape(B, C, H, W), weights


def _reference(feature_1, feature_2, params):
    """Pure-JAX reference mirroring the PyTorch forward (f32 math)."""
    w1, b1, w2, b2 = params
    B, _, D = feature_1.shape
    x = feature_1.reshape(B, D).astype(jnp.float32)
    h = jnp.maximum(x @ w1 + b1, 0.0)
    e = h @ w2 + b2
    wts = jax.nn.softmax(e, axis=-1)
    out = feature_2.astype(jnp.float32) * wts[:, :, None, None]
    return out, wts


if __name__ == "__main__":
    key = jax.random.PRNGKey(0)
    k_f1, k_f2, k_p = jax.random.split(key, 3)

    B, HIDDEN, H, W = 2, 32, 16, 16
    feature_1 = jax.random.normal(k_f1, (B, 1, HIDDEN), jnp.float32)
    feature_2 = jax.random.normal(k_f2, (B, NUM_CLASSES, H, W), jnp.float32)
    params = init_params(HIDDEN, k_p)

    # --- float32 path (exact softmax divide -> tight tolerance) ---
    out, weights = attention_forward(feature_1, feature_2, params)
    out = jax.block_until_ready(out)
    weights = jax.block_until_ready(weights)

    ref_out, ref_w = _reference(feature_1, feature_2, params)
    assert out.shape == (B, NUM_CLASSES, H, W)
    assert weights.shape == (B, NUM_CLASSES)
    assert jnp.allclose(weights, ref_w, atol=1e-4, rtol=1e-4)
    assert jnp.allclose(out, ref_out, atol=1e-4, rtol=1e-4)

    # --- bf16 streaming path (native-dtype f2/out; multiply stays in bf16) ---
    f2_bf16 = feature_2.astype(jnp.bfloat16)
    out_bf16, w_bf16 = attention_forward(feature_1, f2_bf16, params)
    out_bf16 = jax.block_until_ready(out_bf16)
    assert out_bf16.dtype == jnp.bfloat16
    ref_bf16, _ = _reference(feature_1, f2_bf16, params)
    assert jnp.allclose(out_bf16.astype(jnp.float32), ref_bf16, atol=3e-2, rtol=3e-2)

    print("KERNEL_OK")
</pallas_src>

<mosaic_0001>
module attributes {stable_mosaic.version = 11 : i64} {
  func.func @_weights_kernel(%arg0: i32, %arg1: memref<2x32xf32, #tpu.memory_space<vmem>>, %arg2: memref<32x64xf32, #tpu.memory_space<vmem>>, %arg3: memref<1x64xf32, #tpu.memory_space<vmem>>, %arg4: memref<64x21xf32, #tpu.memory_space<vmem>>, %arg5: memref<1x21xf32, #tpu.memory_space<vmem>>, %arg6: memref<2x21xf32, #tpu.memory_space<vmem>>) attributes {dimension_semantics = [#tpu.dimension_semantics<parallel>], iteration_bounds = array<i64: 1>, scalar_prefetch = 0 : i64, scratch_operands = 0 : i64, tpu.core_type = #tpu.core_type<tc>, window_params = [{transform_indices = @transform_0, window_bounds = array<i64: 2, 32>}, {pipeline_mode = #tpu.pipeline_mode<synchronous>, transform_indices = @transform_1, window_bounds = array<i64: 32, 64>}, {pipeline_mode = #tpu.pipeline_mode<synchronous>, transform_indices = @transform_2, window_bounds = array<i64: 1, 64>}, {pipeline_mode = #tpu.pipeline_mode<synchronous>, transform_indices = @transform_3, window_bounds = array<i64: 64, 21>}, {pipeline_mode = #tpu.pipeline_mode<synchronous>, transform_indices = @transform_4, window_bounds = array<i64: 1, 21>}, {transform_indices = @transform_5, window_bounds = array<i64: 2, 21>}]} {
    %c0 = arith.constant 0 : index
    %c0_0 = arith.constant 0 : index
    %0 = vector.load %arg1[%c0, %c0_0] : memref<2x32xf32, #tpu.memory_space<vmem>>, vector<2x32xf32>
    %c0_1 = arith.constant 0 : index
    %c0_2 = arith.constant 0 : index
    %1 = vector.load %arg2[%c0_1, %c0_2] : memref<32x64xf32, #tpu.memory_space<vmem>>, vector<32x64xf32>
    %cst = arith.constant dense<0.000000e+00> : vector<2x64xf32>
    %2 = tpu.matmul %0, %1, %cst {dimension_numbers = #tpu.dot_dimension_numbers<[1], [0], [0], [1], [0, 0, 1, 1], [], []>} : vector<2x32xf32>, vector<32x64xf32>, vector<2x64xf32> -> vector<2x64xf32>
    %c0_3 = arith.constant 0 : index
    %c0_4 = arith.constant 0 : index
    %3 = vector.load %arg3[%c0_3, %c0_4] : memref<1x64xf32, #tpu.memory_space<vmem>>, vector<1x64xf32>
    %4 = vector.broadcast %3 : vector<1x64xf32> to vector<2x64xf32>
    %5 = arith.addf %2, %4 : vector<2x64xf32>
    %cst_5 = arith.constant 0.000000e+00 : f32
    %6 = vector.broadcast %cst_5 : f32 to vector<2x64xf32>
    %7 = arith.maximumf %5, %6 : vector<2x64xf32>
    %c0_6 = arith.constant 0 : index
    %c0_7 = arith.constant 0 : index
    %8 = vector.load %arg4[%c0_6, %c0_7] : memref<64x21xf32, #tpu.memory_space<vmem>>, vector<64x21xf32>
    %cst_8 = arith.constant dense<0.000000e+00> : vector<2x21xf32>
    %9 = tpu.matmul %7, %8, %cst_8 {dimension_numbers = #tpu.dot_dimension_numbers<[1], [0], [0], [1], [0, 0, 1, 1], [], []>} : vector<2x64xf32>, vector<64x21xf32>, vector<2x21xf32> -> vector<2x21xf32>
    %c0_9 = arith.constant 0 : index
    %c0_10 = arith.constant 0 : index
    %10 = vector.load %arg5[%c0_9, %c0_10] : memref<1x21xf32, #tpu.memory_space<vmem>>, vector<1x21xf32>
    %11 = vector.broadcast %10 : vector<1x21xf32> to vector<2x21xf32>
    %12 = arith.addf %9, %11 : vector<2x21xf32>
    %cst_11 = arith.constant dense<0xFF800000> : vector<2xf32>
    %13 = vector.multi_reduction <maximumf>, %12, %cst_11 [1] : vector<2x21xf32> to vector<2xf32>
    %14 = vector.shape_cast %13 : vector<2xf32> to vector<2x1xf32>
    %15 = vector.broadcast %14 : vector<2x1xf32> to vector<2x21xf32>
    %16 = arith.subf %12, %15 : vector<2x21xf32>
    %17 = math.exp %16 : vector<2x21xf32>
    %cst_12 = arith.constant dense<0.000000e+00> : vector<2xf32>
    %18 = vector.multi_reduction <add>, %17, %cst_12 [1] : vector<2x21xf32> to vector<2xf32>
    %19 = vector.shape_cast %18 : vector<2xf32> to vector<2x1xf32>
    %20 = vector.broadcast %19 : vector<2x1xf32> to vector<2x21xf32>
    %21 = arith.divf %17, %20 : vector<2x21xf32>
    %c0_13 = arith.constant 0 : index
    %c0_14 = arith.constant 0 : index
    %22 = vector.load %arg6[%c0_13, %c0_14] : memref<2x21xf32, #tpu.memory_space<vmem>>, vector<2x21xf32>
    tpu.vector_store %arg6[%c0_13, %c0_14], %21 {strides = array<i32>} : memref<2x21xf32, #tpu.memory_space<vmem>>, vector<2x21xf32>,
    return
  }
  func.func @transform_0(%arg0: i32) -> (i32, i32) {
    %c0_i32 = arith.constant 0 : i32
    %c0_i32_0 = arith.constant 0 : i32
    return %arg0, %c0_i32 : i32, i32
  }
  func.func @transform_1(%arg0: i32) -> (i32, i32) {
    %c0_i32 = arith.constant 0 : i32
    %c0_i32_0 = arith.constant 0 : i32
    %c0_i32_1 = arith.constant 0 : i32
    return %c0_i32, %c0_i32_0 : i32, i32
  }
  func.func @transform_2(%arg0: i32) -> (i32, i32) {
    %c0_i32 = arith.constant 0 : i32
    %c0_i32_0 = arith.constant 0 : i32
    %c0_i32_1 = arith.constant 0 : i32
    return %c0_i32, %c0_i32_0 : i32, i32
  }
  func.func @transform_3(%arg0: i32) -> (i32, i32) {
    %c0_i32 = arith.constant 0 : i32
    %c0_i32_0 = arith.constant 0 : i32
    %c0_i32_1 = arith.constant 0 : i32
    return %c0_i32, %c0_i32_0 : i32, i32
  }
  func.func @transform_4(%arg0: i32) -> (i32, i32) {
    %c0_i32 = arith.constant 0 : i32
    %c0_i32_0 = arith.constant 0 : i32
    %c0_i32_1 = arith.constant 0 : i32
    return %c0_i32, %c0_i32_0 : i32, i32
  }
  func.func @transform_5(%arg0: i32) -> (i32, i32) {
    %c0_i32 = arith.constant 0 : i32
    %c0_i32_0 = arith.constant 0 : i32
    return %arg0, %c0_i32 : i32, i32
  }
}

</mosaic_0001>

<bundles_post_ra>
// kernel: tpu_custom_call.1
= control target key start
LH: loop header
LB: loop body
LE: loop exit
PB: predicated region body
PF: predicated region fallthrough
CT: control target
= control target key end

     0   :  { %v301_v1 = vmov 0.0   ;;  %vm302_vm0 = vmmov 0   ;;  %s387_s0 = inlined_call_operand.vmem [shape: f32[2,32], index: 0, kind: input, shape index: {}]   ;;  %s388_s1 = inlined_call_operand.vmem [shape: f32[32,64], index: 1, kind: input, shape index: {}]   ;;  %s389_s2 = inlined_call_operand.vmem [shape: f32[1,64], index: 2, kind: input, shape index: {}]   ;;  %s390_s3 = inlined_call_operand.vmem [shape: f32[64,21], index: 3, kind: input, shape index: {}]   ;;  %s391_s4 = inlined_call_operand.vmem [shape: f32[1,21], index: 4, kind: input, shape index: {}]   ;;  %s392_s5 = inlined_call_operand.hbm [shape: f32[2,21], index: 5, kind: output, shape index: {}]  }
   0x1   :  { %v25_v0 = vld [vmem:[%s388_s1 + $0x18] sm:$0xff]  ;;  %242 = vmatprep.subr.mxu0 %v301_v1  ;;  %v24_v2 = vld [vmem:[%s388_s1 + $0x10] sm:$0xff]  ;;  %250 = vmatprep.mubr.msk.f32.mxu0 %vm302_vm0, %v301_v1  ;;  %v23_v5 = vld [vmem:[%s388_s1 + $0x8] sm:$0xff] }
   0x2   :  { %v115_v3 = vld [vmem:[%s390_s3 + $0x38] sm:$0xff]  ;;  %243 = vmatpush3.msra.mxu0 %v25_v0  ;;  %253 = vmatprep.subr.mxu1 %v301_v1  ;;  %v114_v4 = vld [vmem:[%s390_s3 + $0x30] sm:$0xff] }
   0x3   :  { %244 = vmatprep.subr.mxu0 %v301_v1  ;;  %254 = vmatpush3.msra.mxu1 %v115_v3 }
   0x4   :  { %10 = vsyncpa [#allocation3], 0  ;;  %245 = vmatpush3.msra.mxu0 %v24_v2  ;;  %255 = vmatprep.subr.mxu1 %v301_v1  ;;  %v113_v6 = vld [vmem:[%s390_s3 + $0x28] sm:$0xff]  ;;  %v22_v7 = vld [vmem:[%s388_s1] sm:$0xff]  ;;  %vm33_vm1 = vcmask 261120   ;;  %vm123_vm2 = vcmask 523264  }
   0x5   :  { %246 = vmatprep.subr.mxu0 %v301_v1  ;;  %256 = vmatpush3.msra.mxu1 %v114_v4  ;;  %v21_v8 = vld [vmem:[%s387_s0] sm:$0x3]  ;;  %v111_v10 = vld [vmem:[%s390_s3 + $0x18] sm:$0xff]  ;;  %v110_v11 = vld [vmem:[%s390_s3 + $0x10] sm:$0xff]  ;;  %vm197_vm3 = vcmask 164864  }
   0x6   :  { %247 = vmatpush3.msra.mxu0 %v23_v5  ;;  %257 = vmatprep.subr.mxu1 %v301_v1  ;;  %v112_v9 = vld [vmem:[%s390_s3 + $0x20] sm:$0xff]  ;;  %v109_v12 = vld [vmem:[%s390_s3 + $0x8] sm:$0xff] }
   0x7   :  { %248 = vmatprep.subr.mxu0 %v301_v1  ;;  %258 = vmatpush3.msra.mxu1 %v113_v6  ;;  %v108_v13 = vld [vmem:[%s390_s3] sm:$0xff] }
   0x8   :  { %249 = vmatpush3.msra.mxu0 %v22_v7  ;;  %259 = vmatprep.subr.mxu1 %v301_v1  ;;  %v224_v14 = vld [vmem:[%s389_s2] ss:$0 sm:$0xff]  ;;  %s303_s2 = smov [#allocation2]  }
   0x9   :  { %251 = vmatmul.mubr.msk.f32.vlgmr.msra.gmra.mxu0 %vm33_vm1, %v21_v8  ;;  %260 = vmatpush3.msra.mxu1 %v112_v9  ;;  %v226_v19 = vld [vmem:[%s391_s4] ss:$0 sm:$0xff]  ;;  %s216_s3 = sshll.u32 %s303_s2, 4  ;;  %s217_s3 = int_to_ptr.vmem [resolvable:$true] %s216_s3 }
   0xa   :  { %261 = vmatprep.subr.mxu1 %v301_v1  ;;  %269 = vmatprep.mubr.msk.f32.mxu1 %vm302_vm0, %v301_v1  ;;  %s279_s4 = scalar_lea.vmem %s217_s3, 32  ;;  %p284_p1 = scmp.lt.s32.totalorder %s217_s3, %s217_s3 }
   0xb   :  { %262 = vmatpush3.msra.mxu1 %v111_v10  ;;  %p280_p0 = scmp.ne.s32.totalorder %s217_s3, %s279_s4  ;;  %p285_p2 = scmp.lt.s32.totalorder %s279_s4, %s279_s4 }
   0xc   :  { %263 = vmatprep.subr.mxu1 %v301_v1 }
   0xd   :  { %264 = vmatpush3.msra.mxu1 %v110_v11  ;;  %p286_p3 = por %p285_p2, %p284_p1 }
   0xe   :  { %265 = vmatprep.subr.mxu1 %v301_v1 }
   0xf   :  { %266 = vmatpush3.msra.mxu1 %v109_v12  ;;  %p287_p4 = pnand %p286_p3, %p280_p0 }
  0x10   :  { %267 = vmatprep.subr.mxu1 %v301_v1 }
  0x11   :  { %268 = vmatpush3.msra.mxu1 %v108_v13 }
  0xc9   :  { %v103_v15 = vpop.f32.mrf.mxu0 }
  0xca   :  { %v104_v16 = vadd.f32 %v224_v14, %v103_v15 }
  0xcb   :  { %v252_v17 = vpop.f32.mrf.mxu0 }
  0xcc   :  { %v107_v18 = vmax.f32 %v104_v16, 0.0 }
  0xce   :  { %270 = vmatmul.mubr.msk.f32.vlgmr.msra.gmra.mxu1 %vm123_vm2, %v107_v18 }
 0x18e   :  { %v193_v20 = vpop.f32.mrf.mxu1 }
 0x18f   :  { %v194_v21 = vadd.f32 %v226_v19, %v193_v20 }
 0x190   :  { %v271_v22 = vpop.f32.mrf.mxu1 }
 0x191   :  { %v198_v23 = vsel %vm197_vm3, %v194_v21, -inf }
 0x192   :  { %199 = vmax.xlane.f32.xlu0 %v198_v23 }
 0x21b   :  { %v200_v24 = vpop.xlane.xlu0 %199 }
 0x21c   :  { %v201_v25 = vsub.f32 %v194_v21, %v200_v24 }
 0x21e   :  { %v202_v26 = vmul.f32 1.442695, %v201_v25 }
 0x220   :  { %275 = vpow2.f32 %v202_v26 }
 0x22d   :  { %v276_v27 = vpop.eup %275 }
 0x22e   :  { %v204_v28 = vsel %vm197_vm3, %v276_v27, 0.0 }
 0x22f   :  { %205 = vadd.xlane.f32.xlu0 %v204_v28 }
 0x2b8   :  { %v206_v29 = vpop.xlane.xlu0 %205 }
 0x2b9   :  { %277 = vrcp.f32 %v206_v29 }
 0x2c6   :  { %v278_v30 = vpop.eup %277 }
 0x2c7   :  { %v208_v31 = vmul.f32 %v278_v30, %v276_v27 }
 0x2c9   :  { %209 = vst.msk [vmem:[#allocation2] sm:$0x3] %vm197_vm3, %v208_v31 }
 0x2ca   :  { %290 = shalt.err (!%p287_p4)
}
 0x2cb   :  { %219 = dma.vmem_to_hbm [thread:$0]  %s217_s3, 32, %s392_s5, [#allocation3]  }
 0x2cc   :  { %299 = dma.done.wait [#allocation3], 32  }
 0x2cd   :  { %300 = vsyncadd [#allocation3], 4294967264 }
 0x2ce   :  { %223 = vsyncpa [#allocation3], 1 }

</bundles_post_ra>
